<compile_context>
chip_gen: v7x
topology: tpu7x:2x2x1
jax: 0.10.0
libtpu: 0.0.40
codegen_flags: <defaults>
</compile_context>

<pallas_src>
import jax
import jax.numpy as jnp
from jax.experimental import pallas as pl
from jax.experimental.pallas import tpu as pltpu

# ---------------- scaled-down configuration (original in comments) -----------
N_FINE      = 4            # original: 50
N_VARS      = 1
AUGMENT_DIM = 10
HIDDEN_DIM  = 256          # original: 2048
NUM_LAYERS  = 2

INPUT_DIM = N_FINE * N_FINE * N_VARS + 1        # 17   (original: 2501)
STATE_DIM = INPUT_DIM - 1                       # 16   feature width of y and v
NET_IN    = 1 + 2 * STATE_DIM                   # 33   width of cat([t, y, v], 1)
NET_OUT   = INPUT_DIM + AUGMENT_DIM             # 27
# TODO(synk): the original __init__ declares the first Linear with
# in_features = 2*(input_dim + augment_dim), which is inconsistent with the
# 1 + 2*(input_dim-1) columns the forward() actually builds; we size the first
# layer to match the forward-pass semantics so the module is runnable.

LANE = 128
SUB  = 8

TK = 128                                        # hidden-dim tile (real scale: 256 on v6e/v7x, 128 on v5e)
assert HIDDEN_DIM % TK == 0
NK = HIDDEN_DIM // TK


def _round_up(x, m):
    return -(-x // m) * m


OUT_PAD = _round_up(STATE_DIM, LANE)            # 128 here; 2560 at full scale


# --------------------------- Pallas kernel -----------------------------------
def _make_kernel(b_pad):
    """3-layer MLP, fused, weight-streaming.  b_pad = padded batch rows of y/v."""

    def kernel(t_ref, y_ref, v_ref, vout_ref,
               w1t_ref, w1y_ref, w1v_ref, b1_ref,
               w2_ref, b2_ref, w3_ref, b3_ref,
               out_ref, acc2_ref, acc3_ref):
        f32 = jnp.float32
        bf16 = jnp.bfloat16
        p = pl.program_id(0)
        k = pl.program_id(1)
        nk = pl.num_programs(1)

        # ----- phase 0: layer 1 on hidden tile k + layer-2 pre-act accumulation -----
        @pl.when(p == 0)
        def _phase0():
            @pl.when(k == 0)
            def _init():
                acc2_ref[...] = jnp.zeros_like(acc2_ref)

            t = t_ref[0]
            # x = [t | y | v] folded into split W1 row blocks (no in-kernel concat);
            # t*w1t + b1 is the per-tile effective bias, computed once per tile.
            pre = (t * w1t_ref[...].astype(f32) + b1_ref[...]
                   + jnp.dot(y_ref[...], w1y_ref[...], preferred_element_type=f32)
                   + jnp.dot(v_ref[...], w1v_ref[...], preferred_element_type=f32))
            h1 = jnp.tanh(pre).astype(bf16)                          # (B, TK)
            # add this K-slice's contribution to every layer-2 column chunk
            for j in range(NK):                                      # static unroll, NK small
                acc2_ref[j] += jnp.dot(h1, w2_ref[:, j * TK:(j + 1) * TK],
                                       preferred_element_type=f32)

        # ----- phase 1: layer-2 tanh on chunk k + layer-3 accumulation --------------
        @pl.when(p == 1)
        def _phase1():
            @pl.when(k == 0)
            def _init():
                acc3_ref[...] = jnp.zeros_like(acc3_ref)

            h2 = jnp.tanh(acc2_ref[k] + b2_ref[...]).astype(bf16)    # (B, TK)
            acc3_ref[...] += jnp.dot(h2, w3_ref[...], preferred_element_type=f32)

            @pl.when(k == nk - 1)
            def _finalize():
                # top half: v passthrough (f32, already lane-padded -> unmasked store)
                out_ref[:b_pad] = vout_ref[...]
                # bottom half: net(x)[:, :input_dim-1] (lane-padded)
                out_ref[b_pad:] = (acc3_ref[...] + b3_ref[...]).astype(out_ref.dtype)

    return kernel


# --------------------------- wrapper ------------------------------------------
def second_order_augmented_odefunc(t, z, params):
    """z: (2N, STATE_DIM) f32 -> (2N, STATE_DIM) f32 = cat([v, net(x)[:, :input_dim-1]], 0)."""
    w1, b1, w2, b2, w3, b3 = params
    n = z.shape[0] // 2
    y = z[:n]
    v = z[n:]

    # pad batch (sublane) dim to a multiple of 8
    b_pad = _round_up(n, SUB)
    if b_pad != n:
        rp = b_pad - n
        y = jnp.pad(y, ((0, rp), (0, 0)))
        v = jnp.pad(v, ((0, rp), (0, 0)))

    # bf16 operands for the MXU (weights are the HBM-bandwidth bottleneck;
    # bf16 halves the streamed bytes; accumulation stays f32).
    y_bf = y.astype(jnp.bfloat16)
    v_bf = v.astype(jnp.bfloat16)
    # v passthrough keeps full f32 precision; lane-pad so the kernel stores it unmasked.
    v_out = jnp.pad(v, ((0, 0), (0, OUT_PAD - STATE_DIM)))

    # split W1 rows to match the columns of concat([t, y, v], 1)
    w1t = w1[0:1, :].astype(jnp.bfloat16)
    w1y = w1[1:1 + STATE_DIM, :].astype(jnp.bfloat16)
    w1v = w1[1 + STATE_DIM:, :].astype(jnp.bfloat16)
    w2_bf = w2.astype(jnp.bfloat16)
    # only the first input_dim-1 output columns are kept downstream: slice W3/b3
    # before lane-padding to a multiple of 128 (drops the discarded columns).
    w3u = jnp.pad(w3[:, :STATE_DIM],
                  ((0, 0), (0, OUT_PAD - STATE_DIM))).astype(jnp.bfloat16)
    b3u = jnp.pad(b3[:, :STATE_DIM], ((0, 0), (0, OUT_PAD - STATE_DIM)))

    t_arr = jnp.asarray(t, jnp.float32).reshape(1)

    # phase-clamped index maps: phase 0 streams W1/b1/W2 k-tiles, phase 1 streams
    # W3/b2 k-tiles; the other phase pins the block index so nothing is re-fetched.
    l1_col = lambda p, k: (0, k + p * (NK - 1 - k))
    l2_row = lambda p, k: (k + p * (NK - 1 - k), 0)
    l3_row = lambda p, k: (p * k, 0)
    b2_col = lambda p, k: (0, p * k)
    const0 = lambda p, k: (0, 0)

    smem = pl.BlockSpec(memory_space=pltpu.MemorySpace.SMEM)

    out_full = pl.pallas_call(
        _make_kernel(b_pad),
        out_shape=jax.ShapeDtypeStruct((2 * b_pad, OUT_PAD), jnp.float32),
        grid=(2, NK),                                       # (phase, hidden-tile k)
        in_specs=[
            smem,                                           # t scalar
            pl.BlockSpec((b_pad, STATE_DIM), const0),       # y  (bf16, resident)
            pl.BlockSpec((b_pad, STATE_DIM), const0),       # v  (bf16, matmul)
            pl.BlockSpec((b_pad, OUT_PAD), const0),         # v  (f32, passthrough)
            pl.BlockSpec((1, TK), l1_col),                  # W1 t-row tile
            pl.BlockSpec((STATE_DIM, TK), l1_col),          # W1 y-rows tile
            pl.BlockSpec((STATE_DIM, TK), l1_col),          # W1 v-rows tile
            pl.BlockSpec((1, TK), l1_col),                  # b1 tile
            pl.BlockSpec((TK, HIDDEN_DIM), l2_row),         # W2 k-row tile
            pl.BlockSpec((1, TK), b2_col),                  # b2 chunk
            pl.BlockSpec((TK, OUT_PAD), l3_row),            # W3 k-row tile
            pl.BlockSpec((1, OUT_PAD), const0),             # b3 (padded)
        ],
        out_specs=pl.BlockSpec((2 * b_pad, OUT_PAD), const0),
        scratch_shapes=[
            pltpu.VMEM((NK, b_pad, TK), jnp.float32),       # layer-2 pre-act accumulator
            pltpu.VMEM((b_pad, OUT_PAD), jnp.float32),      # layer-3 accumulator
        ],
        compiler_params=pltpu.CompilerParams(
            # both axes carry accumulator state across steps -> sequential
            dimension_semantics=("arbitrary", "arbitrary"),
            vmem_limit_bytes=32 * 1024 * 1024,
        ),
    )(t_arr, y_bf, v_bf, v_out, w1t, w1y, w1v, b1, w2_bf, b2, w3u, b3u)

    if b_pad == n:
        return out_full[:, :STATE_DIM]
    # drop padded rows / lanes when the batch was not a multiple of 8
    return jnp.concatenate([out_full[:n], out_full[b_pad:b_pad + n]],
                           axis=0)[:, :STATE_DIM]


# --------------------------- plain-JAX reference ------------------------------
def _reference(t, z, params):
    w1, b1, w2, b2, w3, b3 = params
    cutoff = z.shape[0] // 2
    y, v = z[:cutoff], z[cutoff:]
    t_vec = jnp.ones((y.shape[0], 1), jnp.float32) * jnp.asarray(t, jnp.float32)
    x = jnp.concatenate([t_vec, y, v], axis=1)
    h = jnp.tanh(x @ w1 + b1)
    h = jnp.tanh(h @ w2 + b2)
    out = h @ w3 + b3
    return jnp.concatenate([v, out[:, :INPUT_DIM - 1]], axis=0)


# --------------------------- deterministic params -----------------------------
def _init_linear(key, fan_in, fan_out):
    """PyTorch nn.Linear default init (uniform +/-1/sqrt(fan_in)); weight stored (in, out)."""
    kw, kb = jax.random.split(key)
    bound = 1.0 / jnp.sqrt(jnp.asarray(fan_in, jnp.float32))
    w = jax.random.uniform(kw, (fan_in, fan_out), jnp.float32, -bound, bound)
    b = jax.random.uniform(kb, (1, fan_out), jnp.float32, -bound, bound)
    return w, b


def make_params(key):
    k1, k2, k3 = jax.random.split(key, 3)
    w1, b1 = _init_linear(k1, NET_IN, HIDDEN_DIM)       # first Linear (see TODO above)
    w2, b2 = _init_linear(k2, HIDDEN_DIM, HIDDEN_DIM)   # num_layers-1 = 1 hidden Linear
    w3, b3 = _init_linear(k3, HIDDEN_DIM, NET_OUT)      # Linear(hidden -> input+aug)
    return (w1, b1, w2, b2, w3, b3)


# --------------------------- main ---------------------------------------------
if __name__ == "__main__":
    key = jax.random.PRNGKey(0)
    kp, kz = jax.random.split(key)

    params = make_params(kp)

    batch_half = 8                                  # N rows in each of y and v (multiple of 8)
    z = jax.random.normal(kz, (2 * batch_half, STATE_DIM), jnp.float32)
    t = 0.5

    fwd = jax.jit(second_order_augmented_odefunc)
    out = jax.block_until_ready(fwd(t, z, params))

    ref = _reference(t, z, params)
    assert out.shape == z.shape, (out.shape, z.shape)
    # bf16 weights/activations with f32 accumulation -> compare loosely vs f32 reference
    assert jnp.allclose(out, ref, rtol=5e-2, atol=5e-2), "Pallas kernel mismatch vs reference"

    print("KERNEL_OK")
</pallas_src>

<mosaic_0001>
module attributes {stable_mosaic.version = 11 : i64} {
  func.func @kernel(%arg0: i32, %arg1: i32, %arg2: memref<1xf32, #tpu.memory_space<smem>>, %arg3: memref<8x16xbf16, #tpu.memory_space<vmem>>, %arg4: memref<8x16xbf16, #tpu.memory_space<vmem>>, %arg5: memref<8x128xf32, #tpu.memory_space<vmem>>, %arg6: memref<1x128xbf16, #tpu.memory_space<vmem>>, %arg7: memref<16x128xbf16, #tpu.memory_space<vmem>>, %arg8: memref<16x128xbf16, #tpu.memory_space<vmem>>, %arg9: memref<1x128xf32, #tpu.memory_space<vmem>>, %arg10: memref<128x256xbf16, #tpu.memory_space<vmem>>, %arg11: memref<1x128xf32, #tpu.memory_space<vmem>>, %arg12: memref<128x128xbf16, #tpu.memory_space<vmem>>, %arg13: memref<1x128xf32, #tpu.memory_space<vmem>>, %arg14: memref<16x128xf32, #tpu.memory_space<vmem>>, %arg15: memref<2x8x128xf32, #tpu.memory_space<vmem>>, %arg16: memref<8x128xf32, #tpu.memory_space<vmem>>) attributes {dimension_semantics = [#tpu.dimension_semantics<arbitrary>, #tpu.dimension_semantics<arbitrary>], iteration_bounds = array<i64: 2, 2>, scalar_prefetch = 0 : i64, scratch_operands = 2 : i64, tpu.core_type = #tpu.core_type<tc>, window_params = [{transform_indices = @transform_0, window_bounds = array<i64: 1>}, {pipeline_mode = #tpu.pipeline_mode<synchronous>, transform_indices = @transform_1, window_bounds = array<i64: 8, 16>}, {pipeline_mode = #tpu.pipeline_mode<synchronous>, transform_indices = @transform_2, window_bounds = array<i64: 8, 16>}, {pipeline_mode = #tpu.pipeline_mode<synchronous>, transform_indices = @transform_3, window_bounds = array<i64: 8, 128>}, {transform_indices = @transform_4, window_bounds = array<i64: 1, 128>}, {transform_indices = @transform_5, window_bounds = array<i64: 16, 128>}, {transform_indices = @transform_6, window_bounds = array<i64: 16, 128>}, {transform_indices = @transform_7, window_bounds = array<i64: 1, 128>}, {transform_indices = @transform_8, window_bounds = array<i64: 128, 256>}, {transform_indices = @transform_9, window_bounds = array<i64: 1, 128>}, {transform_indices = @transform_10, window_bounds = array<i64: 128, 128>}, {pipeline_mode = #tpu.pipeline_mode<synchronous>, transform_indices = @transform_11, window_bounds = array<i64: 1, 128>}, {pipeline_mode = #tpu.pipeline_mode<synchronous>, transform_indices = @transform_12, window_bounds = array<i64: 16, 128>}]} {
    %c0_i32 = arith.constant 0 : i32
    %0 = arith.cmpi eq, %arg0, %c0_i32 : i32
    %1 = arith.extui %0 : i1 to i32
    %c0_i32_0 = arith.constant 0 : i32
    %2 = arith.cmpi ne, %1, %c0_i32_0 : i32
    scf.if %2 {
      %c0_i32_2 = arith.constant 0 : i32
      %6 = arith.cmpi eq, %arg1, %c0_i32_2 : i32
      %7 = arith.extui %6 : i1 to i32
      %c0_i32_3 = arith.constant 0 : i32
      %8 = arith.cmpi ne, %7, %c0_i32_3 : i32
      scf.if %8 {
        %cst_33 = arith.constant 0.000000e+00 : f32
        %43 = vector.broadcast %cst_33 : f32 to vector<2x8x128xf32>
        %c0_34 = arith.constant 0 : index
        %c0_35 = arith.constant 0 : index
        %c0_36 = arith.constant 0 : index
        %44 = vector.load %arg15[%c0_34, %c0_35, %c0_36] : memref<2x8x128xf32, #tpu.memory_space<vmem>>, vector<2x8x128xf32>
        tpu.vector_store %arg15[%c0_34, %c0_35, %c0_36], %43 {strides = array<i32>} : memref<2x8x128xf32, #tpu.memory_space<vmem>>, vector<2x8x128xf32>,
      } else {
      }
      %c0 = arith.constant 0 : index
      %9 = memref.load %arg2[%c0] : memref<1xf32, #tpu.memory_space<smem>>
      %c0_4 = arith.constant 0 : index
      %c0_5 = arith.constant 0 : index
      %10 = vector.load %arg6[%c0_4, %c0_5] : memref<1x128xbf16, #tpu.memory_space<vmem>>, vector<1x128xbf16>
      %11 = arith.extf %10 : vector<1x128xbf16> to vector<1x128xf32>
      %12 = vector.broadcast %9 : f32 to vector<1x128xf32>
      %13 = arith.mulf %12, %11 : vector<1x128xf32>
      %c0_6 = arith.constant 0 : index
      %c0_7 = arith.constant 0 : index
      %14 = vector.load %arg9[%c0_6, %c0_7] : memref<1x128xf32, #tpu.memory_space<vmem>>, vector<1x128xf32>
      %15 = arith.addf %13, %14 : vector<1x128xf32>
      %c0_8 = arith.constant 0 : index
      %c0_9 = arith.constant 0 : index
      %16 = vector.load %arg3[%c0_8, %c0_9] : memref<8x16xbf16, #tpu.memory_space<vmem>>, vector<8x16xbf16>
      %c0_10 = arith.constant 0 : index
      %c0_11 = arith.constant 0 : index
      %17 = vector.load %arg7[%c0_10, %c0_11] : memref<16x128xbf16, #tpu.memory_space<vmem>>, vector<16x128xbf16>
      %cst = arith.constant dense<0.000000e+00> : vector<8x128xf32>
      %18 = tpu.matmul %16, %17, %cst {dimension_numbers = #tpu.dot_dimension_numbers<[1], [0], [0], [1], [0, 0, 1, 1], [], []>} : vector<8x16xbf16>, vector<16x128xbf16>, vector<8x128xf32> -> vector<8x128xf32>
      %19 = vector.broadcast %15 : vector<1x128xf32> to vector<8x128xf32>
      %20 = arith.addf %19, %18 : vector<8x128xf32>
      %c0_12 = arith.constant 0 : index
      %c0_13 = arith.constant 0 : index
      %21 = vector.load %arg4[%c0_12, %c0_13] : memref<8x16xbf16, #tpu.memory_space<vmem>>, vector<8x16xbf16>
      %c0_14 = arith.constant 0 : index
      %c0_15 = arith.constant 0 : index
      %22 = vector.load %arg8[%c0_14, %c0_15] : memref<16x128xbf16, #tpu.memory_space<vmem>>, vector<16x128xbf16>
      %cst_16 = arith.constant dense<0.000000e+00> : vector<8x128xf32>
      %23 = tpu.matmul %21, %22, %cst_16 {dimension_numbers = #tpu.dot_dimension_numbers<[1], [0], [0], [1], [0, 0, 1, 1], [], []>} : vector<8x16xbf16>, vector<16x128xbf16>, vector<8x128xf32> -> vector<8x128xf32>
      %24 = arith.addf %20, %23 : vector<8x128xf32>
      %25 = math.tanh %24 : vector<8x128xf32>
      %26 = arith.truncf %25 : vector<8x128xf32> to vector<8x128xbf16>
      %c0_17 = arith.constant 0 : index
      %c0_18 = arith.constant 0 : index
      %c0_19 = arith.constant 0 : index
      %27 = vector.load %arg15[%c0_17, %c0_18, %c0_19] : memref<2x8x128xf32, #tpu.memory_space<vmem>>, vector<1x8x128xf32>
      %28 = vector.shape_cast %27 : vector<1x8x128xf32> to vector<8x128xf32>
      %c0_20 = arith.constant 0 : index
      %c0_21 = arith.constant 0 : index
      %29 = vector.load %arg10[%c0_20, %c0_21] : memref<128x256xbf16, #tpu.memory_space<vmem>>, vector<128x128xbf16>
      %cst_22 = arith.constant dense<0.000000e+00> : vector<8x128xf32>
      %30 = tpu.matmul %26, %29, %cst_22 {dimension_numbers = #tpu.dot_dimension_numbers<[1], [0], [0], [1], [0, 0, 1, 1], [], []>} : vector<8x128xbf16>, vector<128x128xbf16>, vector<8x128xf32> -> vector<8x128xf32>
      %31 = arith.addf %28, %30 : vector<8x128xf32>
      %c0_23 = arith.constant 0 : index
      %c0_24 = arith.constant 0 : index
      %c0_25 = arith.constant 0 : index
      %32 = vector.load %arg15[%c0_23, %c0_24, %c0_25] : memref<2x8x128xf32, #tpu.memory_space<vmem>>, vector<1x8x128xf32>
      %33 = vector.shape_cast %32 : vector<1x8x128xf32> to vector<8x128xf32>
      %34 = vector.shape_cast %31 : vector<8x128xf32> to vector<1x8x128xf32>
      tpu.vector_store %arg15[%c0_23, %c0_24, %c0_25], %34 {strides = array<i32>} : memref<2x8x128xf32, #tpu.memory_space<vmem>>, vector<1x8x128xf32>,
      %c1 = arith.constant 1 : index
      %c0_26 = arith.constant 0 : index
      %c0_27 = arith.constant 0 : index
      %35 = vector.load %arg15[%c1, %c0_26, %c0_27] : memref<2x8x128xf32, #tpu.memory_space<vmem>>, vector<1x8x128xf32>
      %36 = vector.shape_cast %35 : vector<1x8x128xf32> to vector<8x128xf32>
      %c0_28 = arith.constant 0 : index
      %c128 = arith.constant 128 : index
      %37 = vector.load %arg10[%c0_28, %c128] : memref<128x256xbf16, #tpu.memory_space<vmem>>, vector<128x128xbf16>
      %cst_29 = arith.constant dense<0.000000e+00> : vector<8x128xf32>
      %38 = tpu.matmul %26, %37, %cst_29 {dimension_numbers = #tpu.dot_dimension_numbers<[1], [0], [0], [1], [0, 0, 1, 1], [], []>} : vector<8x128xbf16>, vector<128x128xbf16>, vector<8x128xf32> -> vector<8x128xf32>
      %39 = arith.addf %36, %38 : vector<8x128xf32>
      %c1_30 = arith.constant 1 : index
      %c0_31 = arith.constant 0 : index
      %c0_32 = arith.constant 0 : index
      %40 = vector.load %arg15[%c1_30, %c0_31, %c0_32] : memref<2x8x128xf32, #tpu.memory_space<vmem>>, vector<1x8x128xf32>
      %41 = vector.shape_cast %40 : vector<1x8x128xf32> to vector<8x128xf32>
      %42 = vector.shape_cast %39 : vector<8x128xf32> to vector<1x8x128xf32>
      tpu.vector_store %arg15[%c1_30, %c0_31, %c0_32], %42 {strides = array<i32>} : memref<2x8x128xf32, #tpu.memory_space<vmem>>, vector<1x8x128xf32>,
    } else {
    }
    %c1_i32 = arith.constant 1 : i32
    %3 = arith.cmpi eq, %arg0, %c1_i32 : i32
    %4 = arith.extui %3 : i1 to i32
    %c0_i32_1 = arith.constant 0 : i32
    %5 = arith.cmpi ne, %4, %c0_i32_1 : i32
    scf.if %5 {
      %c0_i32_2 = arith.constant 0 : i32
      %6 = arith.cmpi eq, %arg1, %c0_i32_2 : i32
      %7 = arith.extui %6 : i1 to i32
      %c0_i32_3 = arith.constant 0 : i32
      %8 = arith.cmpi ne, %7, %c0_i32_3 : i32
      scf.if %8 {
        %cst_15 = arith.constant 0.000000e+00 : f32
        %25 = vector.broadcast %cst_15 : f32 to vector<8x128xf32>
        %c0_16 = arith.constant 0 : index
        %c0_17 = arith.constant 0 : index
        %26 = vector.load %arg16[%c0_16, %c0_17] : memref<8x128xf32, #tpu.memory_space<vmem>>, vector<8x128xf32>
        tpu.vector_store %arg16[%c0_16, %c0_17], %25 {strides = array<i32>} : memref<8x128xf32, #tpu.memory_space<vmem>>, vector<8x128xf32>,
      } else {
      }
      %9 = arith.index_cast %arg1 : i32 to index
      %c0 = arith.constant 0 : index
      %c0_4 = arith.constant 0 : index
      %10 = vector.load %arg15[%9, %c0, %c0_4] : memref<2x8x128xf32, #tpu.memory_space<vmem>>, vector<1x8x128xf32>
      %11 = vector.shape_cast %10 : vector<1x8x128xf32> to vector<8x128xf32>
      %c0_5 = arith.constant 0 : index
      %c0_6 = arith.constant 0 : index
      %12 = vector.load %arg11[%c0_5, %c0_6] : memref<1x128xf32, #tpu.memory_space<vmem>>, vector<1x128xf32>
      %13 = vector.broadcast %12 : vector<1x128xf32> to vector<8x128xf32>
      %14 = arith.addf %11, %13 : vector<8x128xf32>
      %15 = math.tanh %14 : vector<8x128xf32>
      %16 = arith.truncf %15 : vector<8x128xf32> to vector<8x128xbf16>
      %c0_7 = arith.constant 0 : index
      %c0_8 = arith.constant 0 : index
      %17 = vector.load %arg16[%c0_7, %c0_8] : memref<8x128xf32, #tpu.memory_space<vmem>>, vector<8x128xf32>
      %c0_9 = arith.constant 0 : index
      %c0_10 = arith.constant 0 : index
      %18 = vector.load %arg12[%c0_9, %c0_10] : memref<128x128xbf16, #tpu.memory_space<vmem>>, vector<128x128xbf16>
      %cst = arith.constant dense<0.000000e+00> : vector<8x128xf32>
      %19 = tpu.matmul %16, %18, %cst {dimension_numbers = #tpu.dot_dimension_numbers<[1], [0], [0], [1], [0, 0, 1, 1], [], []>} : vector<8x128xbf16>, vector<128x128xbf16>, vector<8x128xf32> -> vector<8x128xf32>
      %20 = arith.addf %17, %19 : vector<8x128xf32>
      %c0_11 = arith.constant 0 : index
      %c0_12 = arith.constant 0 : index
      %21 = vector.load %arg16[%c0_11, %c0_12] : memref<8x128xf32, #tpu.memory_space<vmem>>, vector<8x128xf32>
      tpu.vector_store %arg16[%c0_11, %c0_12], %20 {strides = array<i32>} : memref<8x128xf32, #tpu.memory_space<vmem>>, vector<8x128xf32>,
      %c1_i32_13 = arith.constant 1 : i32
      %22 = arith.cmpi eq, %arg1, %c1_i32_13 : i32
      %23 = arith.extui %22 : i1 to i32
      %c0_i32_14 = arith.constant 0 : i32
      %24 = arith.cmpi ne, %23, %c0_i32_14 : i32
      scf.if %24 {
        %c0_15 = arith.constant 0 : index
        %c0_16 = arith.constant 0 : index
        %25 = vector.load %arg5[%c0_15, %c0_16] : memref<8x128xf32, #tpu.memory_space<vmem>>, vector<8x128xf32>
        %c0_17 = arith.constant 0 : index
        %c0_18 = arith.constant 0 : index
        %26 = vector.load %arg14[%c0_17, %c0_18] : memref<16x128xf32, #tpu.memory_space<vmem>>, vector<8x128xf32>
        tpu.vector_store %arg14[%c0_17, %c0_18], %25 {strides = array<i32>} : memref<16x128xf32, #tpu.memory_space<vmem>>, vector<8x128xf32>,
        %c0_19 = arith.constant 0 : index
        %c0_20 = arith.constant 0 : index
        %27 = vector.load %arg16[%c0_19, %c0_20] : memref<8x128xf32, #tpu.memory_space<vmem>>, vector<8x128xf32>
        %c0_21 = arith.constant 0 : index
        %c0_22 = arith.constant 0 : index
        %28 = vector.load %arg13[%c0_21, %c0_22] : memref<1x128xf32, #tpu.memory_space<vmem>>, vector<1x128xf32>
        %29 = vector.broadcast %28 : vector<1x128xf32> to vector<8x128xf32>
        %30 = arith.addf %27, %29 : vector<8x128xf32>
        %c8 = arith.constant 8 : index
        %c0_23 = arith.constant 0 : index
        %31 = vector.load %arg14[%c8, %c0_23] : memref<16x128xf32, #tpu.memory_space<vmem>>, vector<8x128xf32>
        tpu.vector_store %arg14[%c8, %c0_23], %30 {strides = array<i32>} : memref<16x128xf32, #tpu.memory_space<vmem>>, vector<8x128xf32>,
      } else {
      }
    } else {
    }
    return
  }
  func.func @transform_0(%arg0: i32, %arg1: i32) -> i32 {
    %c0_i32 = arith.constant 0 : i32
    %c0_i32_0 = arith.constant 0 : i32
    return %c0_i32 : i32
  }
  func.func @transform_1(%arg0: i32, %arg1: i32) -> (i32, i32) {
    %c0_i32 = arith.constant 0 : i32
    %c0_i32_0 = arith.constant 0 : i32
    %c0_i32_1 = arith.constant 0 : i32
    return %c0_i32, %c0_i32_0 : i32, i32
  }
  func.func @transform_2(%arg0: i32, %arg1: i32) -> (i32, i32) {
    %c0_i32 = arith.constant 0 : i32
    %c0_i32_0 = arith.constant 0 : i32
    %c0_i32_1 = arith.constant 0 : i32
    return %c0_i32, %c0_i32_0 : i32, i32
  }
  func.func @transform_3(%arg0: i32, %arg1: i32) -> (i32, i32) {
    %c0_i32 = arith.constant 0 : i32
    %c0_i32_0 = arith.constant 0 : i32
    %c0_i32_1 = arith.constant 0 : i32
    return %c0_i32, %c0_i32_0 : i32, i32
  }
  func.func @transform_4(%arg0: i32, %arg1: i32) -> (i32, i32) {
    %c1_i32 = arith.constant 1 : i32
    %0 = arith.subi %c1_i32, %arg1 : i32
    %1 = arith.muli %arg0, %0 : i32
    %2 = arith.addi %arg1, %1 : i32
    %c0_i32 = arith.constant 0 : i32
    %c0_i32_0 = arith.constant 0 : i32
    return %c0_i32, %2 : i32, i32
  }
  func.func @transform_5(%arg0: i32, %arg1: i32) -> (i32, i32) {
    %c1_i32 = arith.constant 1 : i32
    %0 = arith.subi %c1_i32, %arg1 : i32
    %1 = arith.muli %arg0, %0 : i32
    %2 = arith.addi %arg1, %1 : i32
    %c0_i32 = arith.constant 0 : i32
    %c0_i32_0 = arith.constant 0 : i32
    return %c0_i32, %2 : i32, i32
  }
  func.func @transform_6(%arg0: i32, %arg1: i32) -> (i32, i32) {
    %c1_i32 = arith.constant 1 : i32
    %0 = arith.subi %c1_i32, %arg1 : i32
    %1 = arith.muli %arg0, %0 : i32
    %2 = arith.addi %arg1, %1 : i32
    %c0_i32 = arith.constant 0 : i32
    %c0_i32_0 = arith.constant 0 : i32
    return %c0_i32, %2 : i32, i32
  }
  func.func @transform_7(%arg0: i32, %arg1: i32) -> (i32, i32) {
    %c1_i32 = arith.constant 1 : i32
    %0 = arith.subi %c1_i32, %arg1 : i32
    %1 = arith.muli %arg0, %0 : i32
    %2 = arith.addi %arg1, %1 : i32
    %c0_i32 = arith.constant 0 : i32
    %c0_i32_0 = arith.constant 0 : i32
    return %c0_i32, %2 : i32, i32
  }
  func.func @transform_8(%arg0: i32, %arg1: i32) -> (i32, i32) {
    %c1_i32 = arith.constant 1 : i32
    %0 = arith.subi %c1_i32, %arg1 : i32
    %1 = arith.muli %arg0, %0 : i32
    %2 = arith.addi %arg1, %1 : i32
    %c0_i32 = arith.constant 0 : i32
    %c0_i32_0 = arith.constant 0 : i32
    return %2, %c0_i32 : i32, i32
  }
  func.func @transform_9(%arg0: i32, %arg1: i32) -> (i32, i32) {
    %0 = arith.muli %arg0, %arg1 : i32
    %c0_i32 = arith.constant 0 : i32
    %c0_i32_0 = arith.constant 0 : i32
    return %c0_i32, %0 : i32, i32
  }
  func.func @transform_10(%arg0: i32, %arg1: i32) -> (i32, i32) {
    %0 = arith.muli %arg0, %arg1 : i32
    %c0_i32 = arith.constant 0 : i32
    %c0_i32_0 = arith.constant 0 : i32
    return %0, %c0_i32 : i32, i32
  }
  func.func @transform_11(%arg0: i32, %arg1: i32) -> (i32, i32) {
    %c0_i32 = arith.constant 0 : i32
    %c0_i32_0 = arith.constant 0 : i32
    %c0_i32_1 = arith.constant 0 : i32
    return %c0_i32, %c0_i32_0 : i32, i32
  }
  func.func @transform_12(%arg0: i32, %arg1: i32) -> (i32, i32) {
    %c0_i32 = arith.constant 0 : i32
    %c0_i32_0 = arith.constant 0 : i32
    %c0_i32_1 = arith.constant 0 : i32
    return %c0_i32, %c0_i32_0 : i32, i32
  }
}

</mosaic_0001>

<bundles_post_ra>
// kernel: second_order_augmented_odefunc.1
= control target key start
LH: loop header
LB: loop body
LE: loop exit
PB: predicated region body
PF: predicated region fallthrough
CT: control target
= control target key end

     0   :  { %s1989_s0 = inlined_call_operand.<no memory space> [shape: f32[1], index: 0, kind: input, shape index: {}]   ;;  %s1990_s1 = inlined_call_operand.vmem [shape: bf16[8,16], index: 1, kind: input, shape index: {}]   ;;  %s1991_s2 = inlined_call_operand.vmem [shape: bf16[8,16], index: 2, kind: input, shape index: {}]   ;;  %s1992_s3 = inlined_call_operand.vmem [shape: f32[8,128], index: 3, kind: input, shape index: {}]   ;;  %s1993_s4 = inlined_call_operand.vmem [shape: bf16[1,256], index: 4, kind: input, shape index: {}]   ;;  %s1994_s5 = inlined_call_operand.vmem [shape: bf16[16,256], index: 5, kind: input, shape index: {}]   ;;  %s1995_s6 = inlined_call_operand.vmem [shape: bf16[16,256], index: 6, kind: input, shape index: {}]   ;;  %s1996_s7 = inlined_call_operand.vmem [shape: f32[1,256], index: 7, kind: input, shape index: {}]   ;;  %s1997_s8 = inlined_call_operand.vmem [shape: bf16[256,256], index: 8, kind: input, shape index: {}]   ;;  %s1998_s9 = inlined_call_operand.vmem [shape: f32[1,256], index: 9, kind: input, shape index: {}]   ;;  %s1999_s10 = inlined_call_operand.vmem [shape: bf16[256,128], index: 10, kind: input, shape index: {}]   ;;  %s2000_s11 = inlined_call_operand.vmem [shape: f32[1,128], index: 11, kind: input, shape index: {}]   ;;  %s2001_s12 = inlined_call_operand.hbm [shape: f32[16,128], index: 12, kind: output, shape index: {}]  }
   0x1   :  { %2005 = sst [smem:[#allocation12_spill]] %s1992_s3 }
   0x2   :  { %2006 = sst [smem:[#allocation13_spill]] %s1994_s5 }
   0x3   :  { %2007 = sst [smem:[#allocation14_spill]] %s1995_s6 }
   0x4   :  { %2008 = sst [smem:[#allocation15_spill]] %s2000_s11 }
   0x5   :  { %2009 = sst [smem:[#allocation16_spill]] %s2001_s12 }
   0x6   :  { %17 = sst [smem:[#allocation4]] %s1989_s0 }
   0x7   :  { %18 = vsyncpa [#allocation8], 0  ;;  %s1768_s23 = smov 0   ;;  %s1770_s24 = smov 0  }
   0x8   :  { %s1772_s25 = smov 0   ;;  %s1774_s26 = smov 0  }
   0x9   :  { %s1776_s27 = smov 0   ;;  %s1778_s28 = smov 0  }
   0xa   :  { %s1780_s29 = smov 0  }
   0xb LB: > { %2010 = sst [smem:[#allocation10_spill]] %s1685_s28  ;;  %s33_s30 = sadd.s32 1, %s1681_s27  ;;  %s1689_s29 = sphi %s1780_s29, %s24_s29   ;;  %s1685_s28 = sphi %s1778_s28, %s2023_s28   ;;  %s1681_s27 = sphi %s1776_s27, %s2027_s27   ;;  %s1677_s26 = sphi %s1774_s26, %s2022_s26   ;;  %s1673_s25 = sphi %s1772_s25, %s2026_s25   ;;  %s1669_s24 = sphi %s1770_s24, %s2025_s24   ;;  %s1665_s23 = sphi %s1768_s23, %s2024_s23  }
   0xc   : > { %p34_p0 = scmp.ge.s32.totalorder %s33_s30, 2  ;;  %s36_s13 = sadd.s32 1, %s1685_s28 }
   0xd   : > { %s156_s14 = ssub.s32 1, %s1681_s27  ;;  %p172_p2 = scmp.ne.s32.totalorder %s1669_s24, %s1665_s23 }
   0xe   : > { %s2029_s30 = smov (%p34_p0, %s33_s30), 0  ;;  %s2031_s13 = smov (!%p34_p0, %s36_s13), %s1685_s28 }
   0xf   : > { %s157_s15 = smul.u32 %s1685_s28, %s156_s14  ;;  %p38_p1 = scmp.ge.s32.totalorder %s2031_s13, 2 }
  0x10   : > { %s159_s16 = ssub.s32 1, %s2029_s30  ;;  %p173_p3 = scmp.eq.s32.totalorder %s1689_s29, 0 }
  0x11   : > { %s2033_s13 = smov (%p38_p1, %s2031_s13), 0  ;;  %s158_s18 = sadd.s32 %s1681_s27, %s157_s15 }
  0x12   : > { %2011 = sst [smem:[#allocation11_spill]] %s2033_s13  ;;  %p1817_p4 = por %p173_p3, %p172_p2 }
  0x13   : > { %s160_s19 = smul.u32 %s159_s16, %s2033_s13  ;;  %s165_s22 = sadd.s32 1, %s1669_s24 }
  0x14   : > { %p1345_p6 = scmp.ge.s32.totalorder %s1689_s29, 4 }
  0x15   : > { %s161_s20 = sadd.s32 %s160_s19, %s2029_s30 }
  0x16   : > { %s162_s21 = ssub.s32 %s158_s18, %s161_s20  ;;  %407 = sbr.rel (%p1345_p6) target bundleno = 51 (0x33), region = 36 }
  0x17   : > { %p163_p5 = scmp.eq.s32.totalorder %s162_s21, 0 }
  0x19   : > { %s1826_s0 = scalar_select %p163_p5, %s1669_s24, %s165_s22  }
  0x1d   : > { %422 = sbr.rel (!%p1817_p4) target bundleno = 40 (0x28), region = 44  ;;  %s424_s14 = sand.u32 (%p1817_p4), 1, %s1669_s24  }
  0x1e   : > { %s1347_s28 = sshll.u32 (%p1817_p4), %s158_s18, 2  ;;  %s1346_s12 = sshll.u32 (%p1817_p4), %s424_s14, 3 }
  0x1f   : > { %s2013_s5 = sld [smem:[#allocation13_spill]] (%p1817_p4)  ;;  %s426_s16 = scalar_lea.vmem (%p1817_p4), [#allocation5], %s1346_s12 }
  0x25   : > { %s431_s15 = scalar_lea.vmem %s2013_s5, %s1347_s28 }
  0x26   : > { %v447_v0 = vld [vmem:[%s431_s15] sm:$0xf]  ;;  %v449_v1 = vld [vmem:[%s431_s15 + $0x8] sm:$0xf] }
  0x27   : > { %448 = vst [vmem:[%s426_s16] sm:$0xf] %v447_v0  ;;  %450 = vst [vmem:[%s426_s16 + $0x4] sm:$0xf] %v449_v1 }
  0x28 PF: > { %477 = sbr.rel (!%p1817_p4) target bundleno = 51 (0x33), region = 85  ;;  %s479_s19 = sand.u32 (%p1817_p4), 1, %s1669_s24  }
  0x29   : > { %s1349_s20 = sshll.u32 (%p1817_p4), %s158_s18, 2  ;;  %s1348_s21 = sshll.u32 (%p1817_p4), %s479_s19, 3 }
  0x2a   : > { %s2014_s6 = sld [smem:[#allocation14_spill]] (%p1817_p4)  ;;  %s481_s3 = scalar_lea.vmem (%p1817_p4), [#allocation6], %s1348_s21 }
  0x30   : > { %s486_s14 = scalar_lea.vmem %s2014_s6, %s1349_s20 }
  0x31   : > { %v502_v2 = vld [vmem:[%s486_s14] sm:$0xf]  ;;  %v504_v3 = vld [vmem:[%s486_s14 + $0x8] sm:$0xf] }
  0x32   : > { %503 = vst [vmem:[%s481_s3] sm:$0xf] %v502_v2  ;;  %505 = vst [vmem:[%s481_s3 + $0x4] sm:$0xf] %v504_v3 }
  0x33 PF: > { %p1350_p7 = scmp.ge.s32.totalorder %s1689_s29, 1  ;;  %p578_p8 = scmp.lt.s32.totalorder %s1689_s29, 5 }
  0x35   : > { %p579_p9 = pnand %p1350_p7, %p578_p8 }
  0x36   : > { %s585_s11 = sand.u32 (!%p579_p9), 1, %s1665_s23   ;;  %s663_s12 = ssub.s32 (!%p579_p9), 1, %s1673_s25 }
  0x37   : > { %582 = sbr.rel (%p579_p9) target bundleno = 835 (0x343), region = 142  ;;  %s1845_s28 = sshll.u32 (!%p579_p9), %s585_s11, 3 }
  0x38   : > { %s664_s13 = smul.u32 (!%p579_p9), %s1677_s26, %s663_s12  ;;  %s587_s21 = scalar_lea.vmem (!%p579_p9), [#allocation5], %s1845_s28 }
  0x39   : > { %s700_s18 = smul.u32 (!%p579_p9), %s1673_s25, %s1677_s26  ;;  %s594_s22 = scalar_lea.vmem (!%p579_p9), [#allocation6], %s1845_s28 }
  0x3a   : > { %s665_s17 = sadd.s32 (!%p579_p9), %s1673_s25, %s664_s13  ;;  %p1358_p0 = scmp.ne.s32.totalorder (!%p579_p9), %s1677_s26, 0 }
  0x3b   : > { %p666_p10 = scmp.lt.s32.totalorder (!%p579_p9), %s665_s17, 1  ;;  %s1353_s15 = sshll.u32 (!%p579_p9), %s665_s17, 4 }
  0x3c   : > { %p691_p11 = scmp.lt.s32.totalorder (!%p579_p9), %s1353_s15, 31  ;;  %p701_p12 = scmp.lt.s32.totalorder (!%p579_p9), %s700_s18, 1 }
  0x3d   : > { %s1356_s3 = sshll.u32 (!%p579_p9), %s700_s18, 4 }
  0x3e   : > { %s2035_s17 = smov (!%p666_p10, %s665_s17), 1  ;;  %s2037_s15 = smov (!%p691_p11, %s1353_s15), 31 }
  0x3f   : > { %s1398_s14 = sshll.u32 %s2037_s15, 3  ;;  %p707_p13 = scmp.lt.s32.totalorder %s1356_s3, 31 }
  0x40   : > { %s1864_s13 = scalar_lea.vmem %s1997_s8, %s1398_s14  ;;  %s2039_s18 = smov (!%p701_p12, %s700_s18), 1 }
  0x41   : > { %s2041_s3 = smov (!%p707_p13, %s1356_s3), 31  ;;  %s703_s16 = scalar_lea.vmem %s1998_s9, %s2039_s18 }
  0x42   : > { %s1357_s19 = sshll.u32 %s2041_s3, 2  ;;  %717 = sbr.rel (%p1358_p0) target bundleno = 529 (0x211), region = 154 }
  0x43   : > { %s1875_s15 = scalar_lea.vmem %s1999_s10, %s1357_s19  ;;  %p1359_p1 = scmp.ne.s32.totalorder (!%p1358_p0), %s1673_s25, 0 }
  0x49   : > { %721 = sbr.rel (%p1359_p1) target bundleno = 80 (0x50), region = 158  ;;  %v1691_v4 = vmov (!%p1359_p1), 0.0  }
  0x4a   : > { %722 = vst [vmem:[#allocation2] sm:$0xff] (!%p1359_p1), %v1691_v4  ;;  %723 = vst [vmem:[#allocation2 + $0x8] sm:$0xff] (!%p1359_p1), %v1691_v4 }
  0x50 PF: > { %v1575_v5 = vld [vmem:[%s587_s21] sm:$0xff]   ;;  %v1692_v6 = vmov 0.0   ;;  %v1576_v7 = vld [vmem:[%s594_s22] sm:$0xff]   ;;  %vm1693_vm0 = vmmov 0   ;;  %vm740_vm1 = vcmask 130048   ;;  %s724_s22 = sld [smem:[#allocation4]]  ;;  %s2015_s11 = scalar_lea.vmem %s1993_s4, %s2035_s17  ;;  %v784_v28 = vlaneseq }
  0x51   : > { %1430 = vmatprep.subr.bf16.mxu1 %v1692_v6  ;;  %1436 = vmatprep.subr.bf16.mxu0 %v1692_v6  ;;  %v731_v8 = vld [vmem:[%s1990_s1] sm:$0xf]  ;;  %v1578_v11 = vld [vmem:[%s1864_s13 + $0x4] ss:$8 sps:$4 sm:$0xff]   ;;  %v1579_v12 = vld [vmem:[%s1864_s13 + $0x10] ss:$8 sps:$4 sm:$0xff]   ;;  %s2016_s20 = scalar_lea.vmem %s1996_s7, %s2035_s17 }
  0x52   : > { %1431 = vmatpush3.bf16.msra.mxu1 %v1575_v5  ;;  %1432 = vmatprep.mubr.msk.bf16.mxu1 %vm1693_vm0, %v1692_v6  ;;  %v789_v9 = vld [vmem:[%s1991_s2] sm:$0xf]  ;;  %v1580_v13 = vld [vmem:[%s1864_s13 + $0x14] ss:$8 sps:$4 sm:$0xff]   ;;  %v1582_v15 = vld [vmem:[%s1864_s13 + $0x24] ss:$8 sps:$4 sm:$0xff]  }
  0x53   : > { %1437 = vmatpush3.bf16.msra.mxu0 %v1576_v7  ;;  %1438 = vmatprep.mubr.msk.bf16.mxu0 %vm1693_vm0, %v1692_v6  ;;  %v1577_v10 = vld [vmem:[%s1864_s13] ss:$8 sps:$4 sm:$0xff]   ;;  %v1583_v16 = vld [vmem:[%s1864_s13 + $0x30] ss:$8 sps:$4 sm:$0xff]   ;;  %v1584_v17 = vld [vmem:[%s1864_s13 + $0x34] ss:$8 sps:$4 sm:$0xff]  }
  0x54   : > { %1442 = vmatprep.subr.bf16.mxu1 %v1692_v6  ;;  %1462 = vmatprep.subr.bf16.mxu0 %v1692_v6  ;;  %v1581_v14 = vld [vmem:[%s1864_s13 + $0x20] ss:$8 sps:$4 sm:$0xff]   ;;  %v1586_v19 = vld [vmem:[%s1864_s13 + $0x44] ss:$8 sps:$4 sm:$0xff]   ;;  %v1587_v20 = vld [vmem:[%s1864_s13 + $0x50] ss:$8 sps:$4 sm:$0xff]  }
  0x55   : > { %1433 = vmatmul.mubr.msk.bf16.vlgmr.msra.gmra.mrb[0].mxu1 %vm740_vm1, %v731_v8  ;;  %v1585_v18 = vld [vmem:[%s1864_s13 + $0x40] ss:$8 sps:$4 sm:$0xff]   ;;  %v1588_v21 = vld [vmem:[%s1864_s13 + $0x54] ss:$8 sps:$4 sm:$0xff]   ;;  %v1590_v23 = vld [vmem:[%s1864_s13 + $0x64] ss:$8 sps:$4 sm:$0xff]  }
  0x56   : > { %1439 = vmatmul.mubr.msk.bf16.vlgmr.msra.gmra.mrb[0].mxu0 %vm740_vm1, %v789_v9  ;;  %1443 = vmatpush3.bf16.msra.mxu1 %v1577_v10  ;;  %v1589_v22 = vld [vmem:[%s1864_s13 + $0x60] ss:$8 sps:$4 sm:$0xff]   ;;  %v1591_v24 = vld [vmem:[%s1864_s13 + $0x70] ss:$8 sps:$4 sm:$0xff]   ;;  %v1592_v25 = vld [vmem:[%s1864_s13 + $0x74] ss:$8 sps:$4 sm:$0xff]   ;;  %v727_v29 = vstv %s724_s22 }
  0x57   : > { %1463 = vmatpush3.bf16.msra.mxu0 %v1578_v11  ;;  %1444 = vmatprep.subr.bf16.mxu1 %v1692_v6  ;;  %v725_v26 = vld [vmem:[%s2015_s11] sm:$0x1]  ;;  %v785_v31 = vshrl.u32 %v784_v28, 7  ;;  %v952_v49 = vld [vmem:[#allocation2 + $0x8] sm:$0xff] }
  0x58   : > { %1464 = vmatprep.subr.bf16.mxu0 %v1692_v6  ;;  %1458 = vmatprep.mubr.msk.bf16.mxu1 %vm1693_vm0, %v1692_v6  ;;  %v726_v27 = vunpack.c.l.bf16 %v725_v26  ;;  %v729_v32 = vld [vmem:[%s2016_s20] sm:$0x1] }
  0x59   : > { %1478 = vmatprep.mubr.msk.bf16.mxu0 %vm1693_vm0, %v1692_v6  ;;  %v786_v34 = vsub.s32 0, %v785_v31  ;;  %v844_v48 = vld [vmem:[#allocation2] sm:$0xff] }
  0x5a   : > { %1445 = vmatpush3.bf16.msra.mxu1 %v1579_v12  ;;  %v728_v30 = vmul.f32 %v727_v29, %v726_v27 }
  0x5b   : > { %1465 = vmatpush3.bf16.msra.mxu0 %v1580_v13  ;;  %1446 = vmatprep.subr.bf16.mxu1 %v1692_v6 }
  0x5c   : > { %1466 = vmatprep.subr.bf16.mxu0 %v1692_v6  ;;  %v730_v33 = vadd.f32 %v729_v32, %v728_v30 }
  0x5e   : > { %1447 = vmatpush3.bf16.msra.mxu1 %v1581_v14  ;;  %v787_v35 = vrot.slane %v730_v33, %v786_v34 }
  0x5f   : > { %1467 = vmatpush3.bf16.msra.mxu0 %v1582_v15  ;;  %1448 = vmatprep.subr.bf16.mxu1 %v1692_v6 }
  0x60   : > { %1468 = vmatprep.subr.bf16.mxu0 %v1692_v6 }
  0x62   : > { %1449 = vmatpush3.bf16.msra.mxu1 %v1583_v16 }
  0x63   : > { %1469 = vmatpush3.bf16.msra.mxu0 %v1584_v17  ;;  %1450 = vmatprep.subr.bf16.mxu1 %v1692_v6 }
  0x64   : > { %1470 = vmatprep.subr.bf16.mxu0 %v1692_v6 }
  0x66   : > { %1451 = vmatpush3.bf16.msra.mxu1 %v1585_v18 }
  0x67   : > { %1471 = vmatpush3.bf16.msra.mxu0 %v1586_v19  ;;  %1452 = vmatprep.subr.bf16.mxu1 %v1692_v6 }
  0x68   : > { %1472 = vmatprep.subr.bf16.mxu0 %v1692_v6 }
  0x6a   : > { %1453 = vmatpush3.bf16.msra.mxu1 %v1587_v20 }
  0x6b   : > { %1473 = vmatpush3.bf16.msra.mxu0 %v1588_v21  ;;  %1454 = vmatprep.subr.bf16.mxu1 %v1692_v6 }
  0x6c   : > { %1474 = vmatprep.subr.bf16.mxu0 %v1692_v6 }
  0x6e   : > { %1455 = vmatpush3.bf16.msra.mxu1 %v1589_v22 }
  0x6f   : > { %1475 = vmatpush3.bf16.msra.mxu0 %v1590_v23  ;;  %1456 = vmatprep.subr.bf16.mxu1 %v1692_v6 }
  0x70   : > { %1476 = vmatprep.subr.bf16.mxu0 %v1692_v6 }
  0x72   : > { %1457 = vmatpush3.bf16.msra.mxu1 %v1591_v24 }
  0x73   : > { %1477 = vmatpush3.bf16.msra.mxu0 %v1592_v25 }
 0x128   : > { %v778_v36 = vpop.f32.mrb[0].mxu1 }
 0x129   : > { %v788_v37 = vadd.f32 %v787_v35, %v778_v36  ;;  %v835_v38 = vpop.f32.mrb[0].mxu0  ;;  %v1434_v39 = vpop.f32.mrb[1].mxu1 }
 0x12a   : > { %v1440_v40 = vpop.f32.mrb[1].mxu0  ;;  %v781_v41 = vpop.f32.mrb[2].mxu1 }
 0x12b   : > { %v841_v42 = vadd.f32 %v835_v38, %v788_v37  ;;  %v838_v43 = vpop.f32.mrb[2].mxu0  ;;  %v1435_v44 = vpop.f32.mrb[3].mxu1 }
 0x12c   : > { %v1441_v45 = vpop.f32.mrb[3].mxu0 }
 0x12d   : > { %1593 = vtanh.f32 %v841_v42 }
 0x137   : > { %v1594_v46 = vpop.eup %1593 }
 0x138   : > { %v843_v47 = vpack.c.bf16 %v1594_v46, %v1594_v46 }
 0x13a   : > { %1459 = vmatmul.mubr.bf16.vlgmr.msra.gmra.mrb[4].mxu1 %v843_v47  ;;  %1479 = vmatmul.mubr.bf16.vlgmr.msra.gmra.mrb[4].mxu0 %v843_v47 }
 0x20d   : > { %v943_v50 = vpop.f32.mrb[4].mxu1  ;;  %v1051_v51 = vpop.f32.mrb[4].mxu0 }
 0x20e   : > { %v949_v52 = vadd.f32 %v943_v50, %v844_v48  ;;  %v1057_v53 = vadd.f32 %v1051_v51, %v952_v49  ;;  %v1460_v54 = vpop.f32.mrb[5].mxu1  ;;  %v1480_v55 = vpop.f32.mrb[5].mxu0 }
 0x20f   : > { %v946_v56 = vpop.f32.mrb[6].mxu1  ;;  %v1054_v57 = vpop.f32.mrb[6].mxu0 }
 0x210   : > { %950 = vst [vmem:[#allocation2] sm:$0xff] %v949_v52  ;;  %1058 = vst [vmem:[#allocation2 + $0x8] sm:$0xff] %v1057_v53  ;;  %v1461_v58 = vpop.f32.mrb[7].mxu1  ;;  %v1481_v59 = vpop.f32.mrb[7].mxu0 }
 0x211 PF: > { %p1380_p2 = scmp.ne.s32.totalorder %s1677_s26, 1 }
 0x212   : > { %p1381_p3 = scmp.ne.s32.totalorder (!%p1380_p2), %s1673_s25, 0 }
 0x213   : > { %1062 = sbr.rel (%p1380_p2) target bundleno = 803 (0x323), region = 162 }
 0x21a   : > { %1066 = sbr.rel (%p1381_p3) target bundleno = 545 (0x221), region = 166  ;;  %v1694_v60 = vmov (!%p1381_p3), 0.0  }
 0x21b   : > { %1067 = vst [vmem:[#allocation3] sm:$0xff] (!%p1381_p3), %v1694_v60 }
 0x221 PF: > { %v1595_v61 = vld [vmem:[%s1875_s15] sm:$0xff]   ;;  %v1695_v62 = vmov 0.0   ;;  %v1596_v63 = vld [vmem:[%s1875_s15 + $0x8] sm:$0xff]   ;;  %vm1696_vm2 = vmmov 0   ;;  %s1382_s26 = sshll.u32 %s1673_s25, 3  ;;  %v1597_v0 = vld [vmem:[%s1875_s15 + $0x10] sm:$0xff]  }
 0x222   : > { %1482 = vmatprep.subr.bf16.mxu0 %v1695_v62  ;;  %1498 = vmatprep.mubr.msk.bf16.mxu0 %vm1696_vm2, %v1695_v62  ;;  %s1069_s17 = scalar_lea.vmem [#allocation2], %s1382_s26  ;;  %v1383_v2 = vld [vmem:[%s703_s16] ss:$0 sm:$0xff]  ;;  %v1598_v3 = vld [vmem:[%s1875_s15 + $0x18] sm:$0xff]   ;;  %v1600_v6 = vld [vmem:[%s1875_s15 + $0x28] sm:$0xff]   ;;  %p1392_p4 = scmp.ne.s32.totalorder %s1673_s25, 1 }
 0x223   : > { %1483 = vmatpush3.bf16.msra.mxu0 %v1595_v61  ;;  %v1070_v1 = vld [vmem:[%s1069_s17] sm:$0xff]  ;;  %v1601_v7 = vld [vmem:[%s1875_s15 + $0x30] sm:$0xff]   ;;  %v1602_v9 = vld [vmem:[%s1875_s15 + $0x38] sm:$0xff]   ;;  %s2017_s5 = sld [smem:[#allocation12_spill]] (!%p1392_p4)  ;;  %s2018_s28 = sld [smem:[#allocation15_spill]] (!%p1392_p4) }
 0x224   : > { %1484 = vmatprep.subr.bf16.mxu0 %v1695_v62  ;;  %v1078_v4 = vadd.f32 %v1383_v2, %v1070_v1  ;;  %v1599_v5 = vld [vmem:[%s1875_s15 + $0x20] sm:$0xff]   ;;  %v1081_v11 = vld [vmem:[#allocation3] sm:$0xff] }
 0x226   : > { %1603 = vtanh.f32 %v1078_v4 }
 0x227   : > { %1485 = vmatpush3.bf16.msra.mxu0 %v1596_v63 }
 0x228   : > { %1486 = vmatprep.subr.bf16.mxu0 %v1695_v62 }
 0x229   : > { %v1192_v17 = vld [vmem:[%s2017_s5] sm:$0xff] (!%p1392_p4) }
 0x22a   : > { %v1393_v19 = vld [vmem:[%s2018_s28] ss:$0 sm:$0xff] (!%p1392_p4)  ;;  %1193 = vst [vmem:[#allocation7] sm:$0xff] (!%p1392_p4), %v1192_v17 }
 0x22b   : > { %1487 = vmatpush3.bf16.msra.mxu0 %v1597_v0 }
 0x22c   : > { %1488 = vmatprep.subr.bf16.mxu0 %v1695_v62 }
 0x22f   : > { %1489 = vmatpush3.bf16.msra.mxu0 %v1598_v3 }
 0x230   : > { %1490 = vmatprep.subr.bf16.mxu0 %v1695_v62  ;;  %v1604_v8 = vpop.eup %1603 }
 0x231   : > { %v1080_v10 = vpack.c.bf16 %v1604_v8, %v1604_v8 }
 0x233   : > { %1491 = vmatpush3.bf16.msra.mxu0 %v1599_v5 }
 0x234   : > { %1492 = vmatprep.subr.bf16.mxu0 %v1695_v62 }
 0x237   : > { %1493 = vmatpush3.bf16.msra.mxu0 %v1600_v6 }
 0x238   : > { %1494 = vmatprep.subr.bf16.mxu0 %v1695_v62 }
 0x23b   : > { %1495 = vmatpush3.bf16.msra.mxu0 %v1601_v7 }
 0x23c   : > { %1496 = vmatprep.subr.bf16.mxu0 %v1695_v62 }
 0x23f   : > { %1497 = vmatpush3.bf16.msra.mxu0 %v1602_v9 }
 0x242   : > { %1499 = vmatmul.mubr.bf16.vlgmr.msra.gmra.mrb[0].mxu0 %v1080_v10 }
 0x312   : > { %1191 = sbr.rel (%p1392_p4) target bundleno = 803 (0x323), region = 170 }
 0x315   : > { %v1180_v12 = vpop.f32.mrb[0].mxu0 }
 0x316   : > { %v1186_v13 = vadd.f32 %v1180_v12, %v1081_v11  ;;  %v1500_v14 = vpop.f32.mrb[1].mxu0 }
 0x317   : > { %v1183_v15 = vpop.f32.mrb[2].mxu0 }
 0x318   : > { %1187 = vst [vmem:[#allocation3] sm:$0xff] %v1186_v13  ;;  %v1501_v16 = vpop.f32.mrb[3].mxu0 }
 0x31f   : > { %v1194_v18 = vld [vmem:[#allocation3] sm:$0xff] }
 0x320   : > { %v1202_v20 = vadd.f32 %v1393_v19, %v1194_v18 }
 0x322   : > { %1203 = vst [vmem:[#allocation7 + $0x8] sm:$0xff] %v1202_v20 }
 0x323 PF: > { %s2019_s23 = sadd.s32 4294967295, %s1689_s29   ;;  %s1697_s25 = smov [#allocation7]  }
 0x324   : > { %p1942_p5 = scmp.eq.s32.totalorder %s2019_s23, 3  ;;  %s1210_s14 = sshll.u32 %s1697_s25, 4  ;;  %s1211_s14 = int_to_ptr.vmem [resolvable:$true] %s1210_s14 }
 0x325   : > { %s1605_s3 = scalar_lea.vmem %s1211_s14, 256  ;;  %p1612_p9 = scmp.lt.s32.totalorder %s1211_s14, %s1211_s14 }
 0x326   : > { %p1606_p6 = scmp.ne.s32.totalorder %s1211_s14, %s1605_s3  ;;  %p1613_p10 = scmp.lt.s32.totalorder %s1605_s3, %s1605_s3 }
 0x328   : > { %p1607_p7 = pnand %p1606_p6, %p1942_p5  ;;  %p1614_p11 = por %p1613_p10, %p1612_p9 }
 0x32a   : > { %p1608_p8 = pneg %p1607_p7 }
 0x32c   : > { %p1615_p12 = pnand %p1614_p11, %p1608_p8 }
 0x32e   : > { %1618 = shalt.err (!%p1615_p12)
}
 0x32f   : > { %s2021_s19 = sld [smem:[#allocation16_spill]] }
 0x335   : > { %s1619_s20 = scalar_lea.hbm %s2021_s19, 256 }
 0x336   : > { %p1620_p13 = scmp.ne.s32.totalorder %s2021_s19, %s1619_s20  ;;  %p1625_p2 = scmp.lt.u32.totalorder %s1619_s20, %s2021_s19 }
 0x338   : > { %p1621_p0 = pnand %p1620_p13, %p1942_p5 }
 0x33a   : > { %p1622_p1 = pneg %p1621_p0 }
 0x33c   : > { %p1627_p3 = pnand %p1625_p2, %p1622_p1 }
 0x33e   : > { %1630 = shalt.err (!%p1627_p3)
}
 0x33f   : > { %s1698_s18 = smov 128   ;;  %s1699_s16 = smov 8  }
 0x340   : > { %1505 = dma.vmem_to_hbm [thread:$0]  (%p1942_p5), %s1211_s14, 256, %s2021_s19, [#allocation8], %s1698_s18, %s1698_s18, %s1699_s16  }
 0x341   : > { %1660 = dma.done.wait (%p1942_p5), [#allocation8], 256  }
 0x342   : > { %1662 = vsyncadd (%p1942_p5), [#allocation8], 4294967040 }
 0x343 PF: > { %s24_s29 = sadd.s32 1, %s1689_s29   ;;  %s2022_s26 = sld [smem:[#allocation10_spill]] }
 0x344   : > { %p21_p4 = scmp.ge.s32.totalorder %s24_s29, 6   ;;  %s2023_s28 = sld [smem:[#allocation11_spill]] }
 0x345   : > { %s2024_s23 = smov %s1669_s24  ;;  %s2025_s24 = smov %s1826_s0 }
 0x346   : > { %s2026_s25 = smov %s1681_s27  ;;  %s2027_s27 = smov %s2029_s30 }
 0x347   :  { %23 = sbr.rel (!%p21_p4) target bundleno = 11 (0xb), region = 227 }
 0x34e   :  { %1226 = vsyncpa [#allocation8], 1 }
 0x34f   :  { %1228 = vsyncpa [#allocation8 + $0x1], 1 }

</bundles_post_ra>
